<compile_context>
chip_gen: v7x
topology: tpu7x:2x2x1
jax: 0.10.0
libtpu: 0.0.40
codegen_flags: <defaults>
</compile_context>

<pallas_src>
import jax
import jax.numpy as jnp
from jax.experimental import pallas as pl
from jax.experimental.pallas import tpu as pltpu


def qa_heads_kernel(emb_ref, w_ref, b_ref, logits_ref, score_ref, mask_ref):
    # emb_ref block: (1, S, D) bf16 — full sequence of one batch element
    # (same block across the row-tile axis, so it is DMA'd only once per b).
    S = emb_ref.shape[1]
    tq = score_ref.shape[1]
    r = pl.program_id(1)

    w = w_ref[...]                                             # (D, 8) bf16
    b = b_ref[...]                                             # (1, 8) f32

    # Row-tile head projection: (tq, D) @ (D, 8) on the MXU, f32 accumulate.
    row_start = pl.multiple_of(r * tq, tq)
    emb_row = emb_ref[0, pl.ds(row_start, tq), :]              # (tq, D) bf16
    h_row = jnp.dot(emb_row, w, preferred_element_type=jnp.float32) + b  # (tq, 8)
    logits_ref[0] = h_row.astype(logits_ref.dtype)

    # Column-side quantities need every position j: full-S projection, then
    # one transpose of the tiny (S, 8) slab (XLU) so columns are lane-major.
    h_full = jnp.dot(emb_ref[0], w, preferred_element_type=jnp.float32) + b  # (S, 8)
    hT = h_full.T                                              # (8, S)

    start_score_cols = hT[4:5, :]                              # (1, S) f32
    end_mask_cols = (hT[3:4, :] > hT[2:3, :]).astype(jnp.float32)   # (1, S) {0,1}

    end_score_rows = h_row[:, 5:6]                             # (tq, 1) f32
    # torch.argmax(x, -1) == 1 over a width-2 pair: ties resolve to index 0,
    # so the mask is simply logit1 > logit0 (strict).
    start_mask_rows = (h_row[:, 1:2] > h_row[:, 0:1]).astype(jnp.float32)  # (tq, 1)

    # VPU broadcast outer products, stored straight into the output blocks.
    score_ref[0] = end_score_rows * start_score_cols                     # (tq, S) f32
    mask_ref[0] = (start_mask_rows * end_mask_cols).astype(jnp.int8)     # exact 0/1


def _pick_row_tile(S):
    """Largest row tile that divides S and keeps the 2x-buffered (tq, S)
    f32+i8 output blocks plus f32 intermediates within ~40 MiB (v7x headroom)."""
    if S <= 512:
        return S
    tq = 512
    while tq > 8 and (S % tq != 0 or tq * S * (2 * 5 + 4 * 4) > (40 << 20)):
        tq //= 2
    return tq


def qa_heads(embeddings, w_packed, b_packed):
    """embeddings: (B, S, D) bf16; w_packed: (D, 8) bf16; b_packed: (1, 8) f32."""
    B, S, D = embeddings.shape
    tq = _pick_row_tile(S)
    assert S % tq == 0

    # Explicit VMEM budget: 2x-buffered blocks + in-kernel f32 intermediates,
    # with slack, clamped under v7x's 64 MiB physical VMEM.
    block_bytes = 2 * (S * D * 2 + tq * S * (4 + 1) + tq * 8 * 4) + D * 8 * 2 + 8 * 4
    interm_bytes = 4 * tq * S * 4 + 2 * S * 8 * 4
    vmem_limit = int(min(max(2 * (block_bytes + interm_bytes), 32 << 20), 64 << 20))

    out_shapes = (
        jax.ShapeDtypeStruct((B, S, 8), jnp.float32),   # packed head logits
        jax.ShapeDtypeStruct((B, S, S), jnp.float32),   # predict_score
        jax.ShapeDtypeStruct((B, S, S), jnp.int8),      # total_mask (exact 0/1)
    )
    slab, score, mask_i8 = pl.pallas_call(
        qa_heads_kernel,
        out_shape=out_shapes,
        grid_spec=pl.GridSpec(
            grid=(B, S // tq),
            in_specs=[
                pl.BlockSpec((1, S, D), lambda b, r: (b, 0, 0)),
                pl.BlockSpec((D, 8), lambda b, r: (0, 0)),
                pl.BlockSpec((1, 8), lambda b, r: (0, 0)),
            ],
            out_specs=[
                pl.BlockSpec((1, tq, 8), lambda b, r: (b, r, 0)),
                pl.BlockSpec((1, tq, S), lambda b, r: (b, r, 0)),
                pl.BlockSpec((1, tq, S), lambda b, r: (b, r, 0)),
            ],
        ),
        compiler_params=pltpu.CompilerParams(
            dimension_semantics=("parallel", "parallel"),
            vmem_limit_bytes=vmem_limit),
    )(embeddings, w_packed, b_packed)

    start_predict = slab[..., 0:2]
    end_predict = slab[..., 2:4]
    # total_mask stays int8 (exact 0/1): avoids an extra full (B,S,S) HBM pass
    # that a bool cast would add; nonzero == True preserves module semantics.
    return start_predict, end_predict, score, mask_i8


def pack_qa_head_params(params):
    """Pack the four Linear heads into a lane-padded (D, 8) / (1, 8) slab."""
    D = params["w_start"].shape[0]
    w8 = jnp.concatenate(
        [params["w_start"], params["w_end"],
         params["w_match1"], params["w_match2"],
         jnp.zeros((D, 2), jnp.float32)], axis=1)                       # (D, 8)
    b8 = jnp.concatenate(
        [params["b_start"], params["b_end"],
         params["b_match1"], params["b_match2"],
         jnp.zeros((2,), jnp.float32)])[None, :]                        # (1, 8)
    return w8, b8


def bert_stub_embeddings(sentence, token_type, attention,
                         tok_table, type_table, pos_table):
    # TODO(synk): pretrained BertModel forward has no in-script Pallas
    # equivalent; deterministic stand-in = token + segment + position lookup.
    emb = tok_table[sentence] + type_table[token_type] + pos_table[None, :, :]
    return emb * attention[..., None].astype(emb.dtype)


@jax.jit
def model_forward(sentence, attention, token_type, params):
    embeddings = bert_stub_embeddings(
        sentence, token_type, attention,
        params["tok_table"], params["type_table"], params["pos_table"])
    w8, b8 = pack_qa_head_params(params)
    # bf16 feed halves the (B, S, D) HBM read and hits native MXU throughput.
    return qa_heads(embeddings.astype(jnp.bfloat16),
                    w8.astype(jnp.bfloat16), b8)


if __name__ == "__main__":
    B, S, D, V = 2, 16, 32, 100  # batch, seq_len, input_embedding_size, vocab

    key = jax.random.PRNGKey(0)
    ks = jax.random.split(key, 14)

    params = {
        "tok_table": jax.random.normal(ks[0], (V, D), jnp.float32) * 0.1,
        "type_table": jax.random.normal(ks[1], (2, D), jnp.float32) * 0.1,
        "pos_table": jax.random.normal(ks[2], (S, D), jnp.float32) * 0.1,
        "w_start": jax.random.normal(ks[3], (D, 2), jnp.float32) * 0.2,
        "b_start": jax.random.normal(ks[4], (2,), jnp.float32) * 0.1,
        "w_end": jax.random.normal(ks[5], (D, 2), jnp.float32) * 0.2,
        "b_end": jax.random.normal(ks[6], (2,), jnp.float32) * 0.1,
        "w_match1": jax.random.normal(ks[7], (D, 1), jnp.float32) * 0.2,  # start_score
        "b_match1": jax.random.normal(ks[8], (1,), jnp.float32) * 0.1,
        "w_match2": jax.random.normal(ks[9], (D, 1), jnp.float32) * 0.2,  # end_score
        "b_match2": jax.random.normal(ks[10], (1,), jnp.float32) * 0.1,
    }

    sentence = jax.random.randint(ks[11], (B, S), 0, V, jnp.int32)
    token_type = jnp.concatenate(
        [jnp.zeros((B, S // 2), jnp.int32), jnp.ones((B, S // 2), jnp.int32)], axis=1)
    attention = jnp.ones((B, S), jnp.int32)

    start_p, end_p, predict_score, total_mask = jax.block_until_ready(
        model_forward(sentence, attention, token_type, params))

    # --- plain-JAX reference check (same bf16 rounding as the kernel) ---
    emb = bert_stub_embeddings(sentence, token_type, attention,
                               params["tok_table"], params["type_table"],
                               params["pos_table"])
    w8, b8 = pack_qa_head_params(params)
    emb_r = emb.astype(jnp.bfloat16).astype(jnp.float32)
    w8_r = w8.astype(jnp.bfloat16).astype(jnp.float32)
    h = emb_r @ w8_r + b8                                   # (B, S, 8)
    r_start, r_end = h[..., 0:2], h[..., 2:4]
    r_ss, r_es = h[..., 4:5], h[..., 5:6]
    r_score = r_es * jnp.swapaxes(r_ss, 1, 2)               # (B,S,1)*(B,1,S)

    assert jnp.allclose(start_p, r_start, atol=1e-4)
    assert jnp.allclose(end_p, r_end, atol=1e-4)
    assert jnp.allclose(predict_score, r_score, atol=1e-4)

    # total_mask (0/1 int8) must be exactly consistent with the returned
    # start/end logits (argmax==1, ties -> index 0), the module's definition.
    k_smask = jnp.argmax(start_p, -1) == 1
    k_emask = jnp.argmax(end_p, -1) == 1
    ref_mask = k_smask[:, :, None] & k_emask[:, None, :]
    assert bool(jnp.all((total_mask != 0) == ref_mask))
    assert bool(jnp.all((total_mask == 0) | (total_mask == 1)))

    assert start_p.shape == (B, S, 2) and end_p.shape == (B, S, 2)
    assert predict_score.shape == (B, S, S) and total_mask.shape == (B, S, S)
    assert total_mask.dtype == jnp.int8

    print("KERNEL_OK")
</pallas_src>

<mosaic_0001>
module attributes {stable_mosaic.version = 11 : i64} {
  func.func @qa_heads_kernel(%arg0: i32, %arg1: i32, %arg2: memref<1x16x32xbf16, #tpu.memory_space<vmem>>, %arg3: memref<32x8xbf16, #tpu.memory_space<vmem>>, %arg4: memref<1x8xf32, #tpu.memory_space<vmem>>, %arg5: memref<1x16x8xf32, #tpu.memory_space<vmem>>, %arg6: memref<1x16x16xf32, #tpu.memory_space<vmem>>, %arg7: memref<1x16x16xi8, #tpu.memory_space<vmem>>) attributes {dimension_semantics = [#tpu.dimension_semantics<parallel>, #tpu.dimension_semantics<parallel>], iteration_bounds = array<i64: 2, 1>, scalar_prefetch = 0 : i64, scratch_operands = 0 : i64, tpu.core_type = #tpu.core_type<tc>, window_params = [{transform_indices = @transform_0, window_bounds = array<i64: 1, 16, 32>}, {pipeline_mode = #tpu.pipeline_mode<synchronous>, transform_indices = @transform_1, window_bounds = array<i64: 32, 8>}, {pipeline_mode = #tpu.pipeline_mode<synchronous>, transform_indices = @transform_2, window_bounds = array<i64: 1, 8>}, {transform_indices = @transform_3, window_bounds = array<i64: 1, 16, 8>}, {transform_indices = @transform_4, window_bounds = array<i64: 1, 16, 16>}, {transform_indices = @transform_5, window_bounds = array<i64: 1, 16, 16>}]} {
    %c0 = arith.constant 0 : index
    %c0_0 = arith.constant 0 : index
    %0 = vector.load %arg3[%c0, %c0_0] : memref<32x8xbf16, #tpu.memory_space<vmem>>, vector<32x8xbf16>
    %c0_1 = arith.constant 0 : index
    %c0_2 = arith.constant 0 : index
    %1 = vector.load %arg4[%c0_1, %c0_2] : memref<1x8xf32, #tpu.memory_space<vmem>>, vector<1x8xf32>
    %c16_i32 = arith.constant 16 : i32
    %2 = arith.muli %arg1, %c16_i32 : i32
    %3 = tpu.assume_multiple %2, 16 : i32
    %c0_3 = arith.constant 0 : index
    %4 = arith.index_cast %3 : i32 to index
    %c0_4 = arith.constant 0 : index
    %5 = vector.load %arg2[%c0_3, %4, %c0_4] : memref<1x16x32xbf16, #tpu.memory_space<vmem>>, vector<1x16x32xbf16>
    %6 = vector.shape_cast %5 : vector<1x16x32xbf16> to vector<16x32xbf16>
    %cst = arith.constant dense<0.000000e+00> : vector<16x8xf32>
    %7 = tpu.matmul %6, %0, %cst {dimension_numbers = #tpu.dot_dimension_numbers<[1], [0], [0], [1], [0, 0, 1, 1], [], []>} : vector<16x32xbf16>, vector<32x8xbf16>, vector<16x8xf32> -> vector<16x8xf32>
    %8 = vector.broadcast %1 : vector<1x8xf32> to vector<16x8xf32>
    %9 = arith.addf %7, %8 : vector<16x8xf32>
    %c0_5 = arith.constant 0 : index
    %c0_6 = arith.constant 0 : index
    %c0_7 = arith.constant 0 : index
    %10 = vector.load %arg5[%c0_5, %c0_6, %c0_7] : memref<1x16x8xf32, #tpu.memory_space<vmem>>, vector<1x16x8xf32>
    %11 = vector.shape_cast %10 : vector<1x16x8xf32> to vector<16x8xf32>
    %12 = vector.shape_cast %9 : vector<16x8xf32> to vector<1x16x8xf32>
    tpu.vector_store %arg5[%c0_5, %c0_6, %c0_7], %12 {strides = array<i32>} : memref<1x16x8xf32, #tpu.memory_space<vmem>>, vector<1x16x8xf32>,
    %c0_8 = arith.constant 0 : index
    %c0_9 = arith.constant 0 : index
    %c0_10 = arith.constant 0 : index
    %13 = vector.load %arg2[%c0_8, %c0_9, %c0_10] : memref<1x16x32xbf16, #tpu.memory_space<vmem>>, vector<1x16x32xbf16>
    %14 = vector.shape_cast %13 : vector<1x16x32xbf16> to vector<16x32xbf16>
    %cst_11 = arith.constant dense<0.000000e+00> : vector<16x8xf32>
    %15 = tpu.matmul %14, %0, %cst_11 {dimension_numbers = #tpu.dot_dimension_numbers<[1], [0], [0], [1], [0, 0, 1, 1], [], []>} : vector<16x32xbf16>, vector<32x8xbf16>, vector<16x8xf32> -> vector<16x8xf32>
    %16 = vector.broadcast %1 : vector<1x8xf32> to vector<16x8xf32>
    %17 = arith.addf %15, %16 : vector<16x8xf32>
    %18 = tpu.transpose %17, [1, 0] : vector<16x8xf32> -> vector<8x16xf32>
    %19 = vector.extract_strided_slice %18 {offsets = [4, 0], sizes = [1, 16], strides = [1, 1]} : vector<8x16xf32> to vector<1x16xf32>
    %20 = vector.extract_strided_slice %18 {offsets = [3, 0], sizes = [1, 16], strides = [1, 1]} : vector<8x16xf32> to vector<1x16xf32>
    %21 = vector.extract_strided_slice %18 {offsets = [2, 0], sizes = [1, 16], strides = [1, 1]} : vector<8x16xf32> to vector<1x16xf32>
    %22 = arith.cmpf ogt, %20, %21 : vector<1x16xf32>
    %23 = arith.extui %22 : vector<1x16xi1> to vector<1x16xi32>
    %24 = arith.sitofp %23 : vector<1x16xi32> to vector<1x16xf32>
    %25 = vector.extract_strided_slice %9 {offsets = [0, 5], sizes = [16, 1], strides = [1, 1]} : vector<16x8xf32> to vector<16x1xf32>
    %26 = vector.extract_strided_slice %9 {offsets = [0, 1], sizes = [16, 1], strides = [1, 1]} : vector<16x8xf32> to vector<16x1xf32>
    %27 = vector.extract_strided_slice %9 {offsets = [0, 0], sizes = [16, 1], strides = [1, 1]} : vector<16x8xf32> to vector<16x1xf32>
    %28 = arith.cmpf ogt, %26, %27 : vector<16x1xf32>
    %29 = arith.extui %28 : vector<16x1xi1> to vector<16x1xi32>
    %30 = arith.sitofp %29 : vector<16x1xi32> to vector<16x1xf32>
    %31 = vector.broadcast %25 : vector<16x1xf32> to vector<16x16xf32>
    %32 = vector.broadcast %19 : vector<1x16xf32> to vector<16x16xf32>
    %33 = arith.mulf %31, %32 : vector<16x16xf32>
    %c0_12 = arith.constant 0 : index
    %c0_13 = arith.constant 0 : index
    %c0_14 = arith.constant 0 : index
    %34 = vector.load %arg6[%c0_12, %c0_13, %c0_14] : memref<1x16x16xf32, #tpu.memory_space<vmem>>, vector<1x16x16xf32>
    %35 = vector.shape_cast %34 : vector<1x16x16xf32> to vector<16x16xf32>
    %36 = vector.shape_cast %33 : vector<16x16xf32> to vector<1x16x16xf32>
    tpu.vector_store %arg6[%c0_12, %c0_13, %c0_14], %36 {strides = array<i32>} : memref<1x16x16xf32, #tpu.memory_space<vmem>>, vector<1x16x16xf32>,
    %37 = vector.broadcast %30 : vector<16x1xf32> to vector<16x16xf32>
    %38 = vector.broadcast %24 : vector<1x16xf32> to vector<16x16xf32>
    %39 = arith.mulf %37, %38 : vector<16x16xf32>
    %40 = arith.fptosi %39 : vector<16x16xf32> to vector<16x16xi8>
    %c0_15 = arith.constant 0 : index
    %c0_16 = arith.constant 0 : index
    %c0_17 = arith.constant 0 : index
    %41 = vector.load %arg7[%c0_15, %c0_16, %c0_17] : memref<1x16x16xi8, #tpu.memory_space<vmem>>, vector<1x16x16xi8>
    %42 = vector.shape_cast %41 : vector<1x16x16xi8> to vector<16x16xi8>
    %43 = vector.shape_cast %40 : vector<16x16xi8> to vector<1x16x16xi8>
    tpu.vector_store %arg7[%c0_15, %c0_16, %c0_17], %43 {strides = array<i32>} : memref<1x16x16xi8, #tpu.memory_space<vmem>>, vector<1x16x16xi8>,
    return
  }
  func.func @transform_0(%arg0: i32, %arg1: i32) -> (i32, i32, i32) {
    %c0_i32 = arith.constant 0 : i32
    %c0_i32_0 = arith.constant 0 : i32
    %c0_i32_1 = arith.constant 0 : i32
    return %arg0, %c0_i32, %c0_i32_0 : i32, i32, i32
  }
  func.func @transform_1(%arg0: i32, %arg1: i32) -> (i32, i32) {
    %c0_i32 = arith.constant 0 : i32
    %c0_i32_0 = arith.constant 0 : i32
    %c0_i32_1 = arith.constant 0 : i32
    return %c0_i32, %c0_i32_0 : i32, i32
  }
  func.func @transform_2(%arg0: i32, %arg1: i32) -> (i32, i32) {
    %c0_i32 = arith.constant 0 : i32
    %c0_i32_0 = arith.constant 0 : i32
    %c0_i32_1 = arith.constant 0 : i32
    return %c0_i32, %c0_i32_0 : i32, i32
  }
  func.func @transform_3(%arg0: i32, %arg1: i32) -> (i32, i32, i32) {
    %c0_i32 = arith.constant 0 : i32
    %c0_i32_0 = arith.constant 0 : i32
    return %arg0, %arg1, %c0_i32 : i32, i32, i32
  }
  func.func @transform_4(%arg0: i32, %arg1: i32) -> (i32, i32, i32) {
    %c0_i32 = arith.constant 0 : i32
    %c0_i32_0 = arith.constant 0 : i32
    return %arg0, %arg1, %c0_i32 : i32, i32, i32
  }
  func.func @transform_5(%arg0: i32, %arg1: i32) -> (i32, i32, i32) {
    %c0_i32 = arith.constant 0 : i32
    %c0_i32_0 = arith.constant 0 : i32
    return %arg0, %arg1, %c0_i32 : i32, i32, i32
  }
}

</mosaic_0001>

<bundles_post_ra>
// kernel: model_forward.1
= control target key start
LH: loop header
LB: loop body
LE: loop exit
PB: predicated region body
PF: predicated region fallthrough
CT: control target
= control target key end

     0   :  { %11 = vsyncpa [#allocation3], 0  ;;  %s1173_s0 = inlined_call_operand.vmem [shape: bf16[2,16,32], index: 0, kind: input, shape index: {}]   ;;  %s1174_s1 = inlined_call_operand.vmem [shape: bf16[32,8], index: 1, kind: input, shape index: {}]   ;;  %s1175_s2 = inlined_call_operand.vmem [shape: f32[1,8], index: 2, kind: input, shape index: {}]   ;;  %s1176_s3 = inlined_call_operand.vmem [shape: f32[2,16,8], index: 3, kind: output, shape index: {0}]   ;;  %s1177_s4 = inlined_call_operand.hbm [shape: f32[2,16,16], index: 4, kind: output, shape index: {1}]   ;;  %s1178_s5 = inlined_call_operand.hbm [shape: s8[2,16,16], index: 5, kind: output, shape index: {2}]  }
   0x1   :  { %13 = vsyncpa [#allocation3 + $0x1], 0 }
   0x2   :  { %14 = vsyncpa [#allocation5], 0 }
   0x3   :  { %16 = vsyncpa [#allocation5 + $0x1], 0  ;;  %s1001_s18 = smov 0   ;;  %s1003_s19 = smov 0  }
   0x4   :  { %s1005_s20 = smov 0   ;;  %s1007_s21 = smov 0  }
   0x5   :  { %s1009_s22 = smov 0   ;;  %s1011_s23 = smov 0  }
   0x6 LB: > { %s711_s24 = sadd.s32 4294967295, %s958_s23   ;;  %s712_s25 = sadd.s32 4294967294, %s958_s23   ;;  %s958_s23 = sphi %s1011_s23, %s22_s23   ;;  %s954_s22 = sphi %s1009_s22, %s1185_s22   ;;  %s950_s21 = sphi %s1007_s21, %s1184_s21   ;;  %s946_s20 = sphi %s1005_s20, %s1183_s20   ;;  %s942_s19 = sphi %s1003_s19, %s1182_s19   ;;  %s938_s18 = sphi %s1001_s18, %s1181_s18  }
   0x7   : > { %s34_s26 = sadd.s32 1, %s954_s22  ;;  %s139_s27 = sadd.s32 1, %s946_s20 }
   0x8   : > { %p36_p0 = scmp.ge.s32.totalorder %s34_s26, 2  ;;  %p149_p1 = scmp.ne.s32.totalorder %s946_s20, %s942_s19 }
   0x9   : > { %p150_p2 = scmp.eq.s32.totalorder %s711_s24, 1  ;;  %p155_p3 = scmp.ne.s32.totalorder %s942_s19, %s938_s18 }
   0xa   : > { %s1187_s26 = smov (%p36_p0, %s34_s26), 0  ;;  %p156_p5 = scmp.eq.s32.totalorder %s712_s25, 1 }
   0xb   : > { %p1041_p4 = por %p150_p2, %p149_p1  ;;  %s134_s29 = ssub.s32 %s954_s22, %s1187_s26 }
   0xc   : > { %p715_p6 = scmp.ge.s32.totalorder %s958_s23, 1  ;;  %p137_p7 = scmp.eq.s32.totalorder %s134_s29, 0 }
   0xd   : > { %p1048_p8 = por %p156_p5, %p155_p3  ;;  %p216_p9 = scmp.lt.s32.totalorder %s958_s23, 3 }
   0xe   : > { %s1054_s6 = scalar_select %p137_p7, %s946_s20, %s139_s27  }
   0xf   : > { %p217_p10 = pnand %p715_p6, %p216_p9 }
  0x10   : > { %v844_v0 = vld [vmem:[%s1174_s1] sm:$0xff] (!%p217_p10)   ;;  %v960_v1 = vmov (!%p217_p10), 0.0   ;;  %v845_v2 = vld [vmem:[%s1174_s1 + $0x8] sm:$0xff] (!%p217_p10)   ;;  %vm961_vm0 = vmmov (!%p217_p10), 0   ;;  %p258_p11 = scmp.lt.s32.totalorder (!%p217_p10), %s950_s21, 1  ;;  %vm311_vm1 = vcmask (!%p217_p10), 261120   ;;  %v470_v25 = vlaneseq (!%p217_p10) }
  0x11   : > { %220 = sbr.rel (%p217_p10) target bundleno = 582 (0x246), region = 32  ;;  %750 = vmatprep.subr.bf16.mxu0 (!%p217_p10), %v960_v1  ;;  %758 = vmatprep.subr.bf16.mxu1 (!%p217_p10), %v960_v1  ;;  %v962_v5 = vmov (!%p217_p10), 5   ;;  %v722_v6 = vld [vmem:[%s1175_s2] ss:$0 sm:$0xff] (!%p217_p10)  ;;  %vm356_vm2 = vcmask (!%p217_p10), 64512   ;;  %s963_s7 = smov (!%p217_p10), 1  }
  0x12   : > { %751 = vmatpush3.bf16.msra.mxu0 (!%p217_p10), %v844_v0  ;;  %754 = vmatprep.mubr.msk.bf16.mxu0 (!%p217_p10), %vm961_vm0, %v960_v1  ;;  %v964_v13 = vmov (!%p217_p10), 1   ;;  %s1082_s8 = sand.u32 (!%p217_p10), 1, %s942_s19   ;;  %v471_v27 = vshrl.u32 (!%p217_p10), %v470_v25, 7  ;;  %s742_s10 = sshll.u32 (!%p217_p10), %s950_s21, 8  ;;  %vm476_vm5 = vcmask (!%p217_p10), 130048  }
  0x13   : > { %752 = vmatprep.subr.bf16.mxu0 (!%p217_p10), %v960_v1  ;;  %759 = vmatpush3.bf16.msra.mxu1 (!%p217_p10), %v844_v0  ;;  %s716_s9 = sshll.u32 (!%p217_p10), %s1082_s8, 4  ;;  %s965_s24 = smov (!%p217_p10), [#allocation2]  }
  0x14   : > { %760 = vmatprep.subr.bf16.mxu1 (!%p217_p10), %v960_v1  ;;  %762 = vmatprep.mubr.msk.bf16.mxu1 (!%p217_p10), %vm961_vm0, %v960_v1  ;;  %v472_v29 = vsub.s32 (!%p217_p10), 4, %v471_v27  ;;  %v491_v31 = vsub.s32 (!%p217_p10), 3, %v471_v27  ;;  %s852_s25 = sshll.u32 (!%p217_p10), %s965_s24, 4  ;;  %s853_s25 = int_to_ptr.vmem [resolvable:$false] %s852_s25 }
  0x15   : > { %835 = vset.pattern.permute.xlu1 (!%p217_p10), %v962_v5  ;;  %842 = vset.pattern.permute.xlu0 (!%p217_p10), %v962_v5  ;;  %s854_s27 = scalar_lea.vmem (!%p217_p10), %s853_s25, 512 }
  0x16   : > { %753 = vmatpush3.bf16.msra.mxu0 (!%p217_p10), %v845_v2 }
  0x17   : > { %761 = vmatpush3.bf16.msra.mxu1 (!%p217_p10), %v845_v2 }
  0x18   : > { %s259_s11 = scalar_select %p258_p11, %s950_s21, 1 }
  0x1a   : > { %s740_s12 = sshll.u32 %s259_s11, 3  ;;  %s741_s16 = sshll.u32 %s259_s11, 4 }
  0x1b   : > { %s262_s15 = scalar_lea.vmem %s1173_s0, %s740_s12  ;;  %s271_s29 = scalar_lea.vmem %s1176_s3, %s741_s16 }
  0x1c   : > { %v846_v3 = vld [vmem:[%s262_s15] sm:$0xff]   ;;  %s250_s11 = scalar_lea.vmem [#allocation2], %s716_s9  ;;  %s522_s16 = scalar_lea.sflag [#allocation3], %s1082_s8 }
  0x1d   : > { %v847_v4 = vld [vmem:[%s262_s15] sm:$0xff]   ;;  %755 = vmatmul.mubr.msk.bf16.vlgmr.msra.gmra.mrb[0].mxu0 %vm311_vm1, %v846_v3  ;;  %s546_s12 = sshll.u32 %s250_s11, 4  ;;  %s1089_s15 = scalar_lea.hbm %s1177_s4, %s742_s10  ;;  %s1091_s12 = int_to_ptr.vmem [resolvable:$true] %s546_s12 }
  0x1e   : > { %763 = vmatmul.mubr.msk.bf16.vlgmr.msra.gmra.mrb[0].mxu1 %vm311_vm1, %v847_v4  ;;  %s848_s17 = scalar_lea.vmem %s1091_s12, 256  ;;  %p855_p1 = scmp.lt.s32.totalorder %s1091_s12, %s853_s25 }
  0x1f   : > { %p849_p12 = scmp.ne.s32.totalorder %s1091_s12, %s848_s17  ;;  %p856_p2 = scmp.lt.s32.totalorder %s854_s27, %s848_s17 }
  0x21   : > { %p850_p13 = pnand %p849_p12, %p1041_p4  ;;  %p857_p3 = por %p856_p2, %p855_p1 }
  0x23   : > { %p851_p0 = pneg %p850_p13 }
  0x25   : > { %p858_p5 = pnand %p857_p3, %p851_p0 }
  0xf0   : > { %v349_v7 = vpop.f32.mrb[0].mxu0 }
  0xf1   : > { %v350_v8 = vadd.f32 %v722_v6, %v349_v7  ;;  %v756_v9 = vpop.f32.mrb[1].mxu0  ;;  %v403_v14 = vpop.f32.mrb[0].mxu1 }
  0xf2   : > { %v352_v10 = vpop.f32.mrb[2].mxu0  ;;  %v404_v15 = vadd.f32 %v722_v6, %v403_v14  ;;  %v764_v16 = vpop.f32.mrb[1].mxu1 }
  0xf3   : > { %357 = vst.msk [vmem:[%s271_s29] sm:$0xff] %vm356_vm2, %v350_v8  ;;  %v353_v11 = vadd.f32 %v722_v6, %v352_v10  ;;  %463 = vperm.xlu1 %835, %v350_v8   ;;  %450 = vrot.lane.b32.xlu0 %v350_v8, %s963_s7  ;;  %v757_v12 = vpop.f32.mrb[3].mxu0  ;;  %v406_v17 = vpop.f32.mrb[2].mxu1 }
  0xf4   : > { %v407_v18 = vadd.f32 %v722_v6, %v406_v17  ;;  %v765_v19 = vpop.f32.mrb[3].mxu1 }
  0xf5   : > { %358 = vst.msk [vmem:[%s271_s29 + $0x8] sm:$0xff] %vm356_vm2, %v353_v11 }
  0xf7   : > { %452 = vrot.lane.b32.xlu0 %v353_v11, %s963_s7  ;;  %836 = vset.pattern.permute.xlu1 %v964_v13 }
  0xfb   : > { %467 = vperm.xlu0 %842, %v353_v11  }
  0xff   : > { %843 = vset.pattern.permute.xlu0 %v964_v13 }
 0x165   : > { %v451_v20 = vpop.permute.xlu0 %450 }
 0x166   : > { %vm456_vm3 = vcmp.gt.f32.partialorder %v350_v8, %v451_v20 }
 0x167   : > { %v730_v22 = vsel %vm456_vm3, 1.0, %v960_v1 }
 0x169   : > { %v453_v21 = vpop.permute.xlu0 %452 }
 0x16a   : > { %vm457_vm4 = vcmp.gt.f32.partialorder %v353_v11, %v453_v21 }
 0x16b   : > { %v731_v23 = vsel %vm457_vm4, 1.0, %v960_v1 }
 0x16c   : > { %v837_v24 = vpack.i.bf16 %v731_v23, %v730_v22 }
 0x16e   : > { %838 = vperm.xlu1 %836, %v837_v24  }
 0x172   : > { %v464_v26 = vpop.permute.xlu1 %463 }
 0x17a   : > { %v468_v34 = vpop.permute.xlu0 %467 }
 0x197   : > { %410 = vxpose.xlu1.b32.start [1/2] (short) (narrow) %v404_v15, 8 }
 0x19b   : > { %411 = vxpose.xlu1.b32.end [2/2] (short) (narrow) %v407_v18, 8 }
 0x1ed   : > { %v839_v28 = vpop.permute.xlu1 %838 }
 0x1ee   : > { %v841_v38 = vunpack.i.h.bf16 %v839_v28  ;;  %v840_v39 = vunpack.i.l.bf16 %v839_v28 }
 0x217   : > { %v426_v30 = vpop.trf.xlu1 }
 0x218   : > { %v443_v32 = vrot.slane %v426_v30, 7  ;;  %v473_v33 = vrot.slane %v426_v30, %v472_v29 }
 0x21a   : > { %vm445_vm6 = vcmp.gt.f32.partialorder %v426_v30, %v443_v32  ;;  %v474_v35 = vmul.f32 %v473_v33, %v464_v26  ;;  %v475_v36 = vmul.f32 %v473_v33, %v468_v34 }
 0x21b   : > { %v729_v37 = vsel %vm445_vm6, 1.0, %v960_v1 }
 0x21c   : > { %477 = vst.msk [vmem:[%s250_s11] sm:$0xff] %vm476_vm5, %v474_v35  ;;  %478 = vst.msk [vmem:[%s250_s11 + $0x8] sm:$0xff] %vm476_vm5, %v475_v36  ;;  %v492_v40 = vrot.slane %v729_v37, %v491_v31 }
 0x21d   : > { %861 = shalt.err (!%p858_p5)
}
 0x21e   : > { %s862_s29 = scalar_lea.hbm %s1089_s15, 256  ;;  %s866_s10 = scalar_lea.hbm %s1177_s4, 512 }
 0x21f   : > { %p863_p6 = scmp.ne.s32.totalorder %s1089_s15, %s862_s29  ;;  %p867_p10 = scmp.lt.u32.totalorder %s1089_s15, %s1177_s4 }
 0x220   : > { %p868_p11 = scmp.lt.u32.totalorder %s866_s10, %s862_s29  ;;  %p870_p13 = scmp.lt.u32.totalorder %s862_s29, %s1089_s15 }
 0x221   : > { %p864_p7 = pnand %p863_p6, %p1041_p4 }
 0x222   : > { %p869_p12 = por %p868_p11, %p867_p10 }
 0x223   : > { %p865_p9 = pneg %p864_p7 }
 0x224   : > { %p871_p0 = por %p870_p13, %p869_p12 }
 0x226   : > { %p872_p1 = pnand %p871_p0, %p865_p9 }
 0x228   : > { %875 = shalt.err (!%p872_p1)
}
 0x229   : > { %s966_s14 = smov 128   ;;  %s967_s17 = smov 8   ;;  %v493_v41 = vmul.f32 %v840_v39, %v492_v40  ;;  %v494_v42 = vmul.f32 %v841_v38, %v492_v40  ;;  %vm509_vm7 = vcmask 123904  }
 0x22a   : > { %766 = dma.vmem_to_hbm [thread:$0]  (%p1041_p4), %s1091_s12, 256, %s1089_s15, %s522_s16, %s966_s14, %s966_s14, %s967_s17  }
 0x22b   : > { %v495_v43 = vtrunc.f32 %v493_v41  ;;  %v496_v44 = vtrunc.f32 %v494_v42  ;;  %s717_s24 = sshll.u32 %s1082_s8, 2  ;;  %s743_s25 = sshll.u32 %s950_s21, 6 }
 0x22c   : > { %s257_s27 = scalar_lea.vmem [#allocation4], %s717_s24  ;;  %s1123_s12 = scalar_lea.hbm %s1178_s5, %s743_s25 }
 0x22d   : > { %v497_v45 = vpack.c.f32.eXmY %v495_v43, %v496_v44, 312  ;;  %s564_s29 = sshll.u32 %s257_s27, 4  ;;  %s527_s21 = scalar_lea.sflag [#allocation5], %s1082_s8  ;;  %s1125_s29 = int_to_ptr.vmem [resolvable:$true] %s564_s29 }
 0x22e   : > { %s876_s15 = scalar_lea.vmem %s1125_s29, 64  ;;  %s968_s16 = smov [#allocation4]  }
 0x22f   : > { %v501_v46 = vpack.c.b8 %v497_v45, %v497_v45  ;;  %p877_p2 = scmp.ne.s32.totalorder %s1125_s29, %s876_s15  ;;  %s880_s10 = sshll.u32 %s968_s16, 4  ;;  %s881_s10 = int_to_ptr.vmem [resolvable:$false] %s880_s10 }
 0x230   : > { %s882_s11 = scalar_lea.vmem %s881_s10, 128  ;;  %p883_p6 = scmp.lt.s32.totalorder %s1125_s29, %s881_s10 }
 0x231   : > { %v503_v47 = vunpack.c.0.s8 %v501_v46  ;;  %v504_v48 = vunpack.c.1.s8 %v501_v46  ;;  %p878_p3 = pnand %p877_p2, %p1041_p4  ;;  %p884_p7 = scmp.lt.s32.totalorder %s882_s11, %s876_s15 }
 0x233   : > { %v505_v49 = vpack.c.b16 %v503_v47, %v503_v47  ;;  %v507_v50 = vpack.c.b16 %v504_v48, %v504_v48  ;;  %p879_p5 = pneg %p878_p3  ;;  %p885_p9 = por %p884_p7, %p883_p6 }
 0x235   : > { %v506_v51 = vpack.c.b8 %v505_v49, %v505_v49  ;;  %v508_v52 = vpack.c.b8 %v507_v50, %v507_v50  ;;  %p886_p10 = pnand %p885_p9, %p879_p5 }
 0x237   : > { %510 = vst.msk [vmem:[%s257_s27] sm:$0x3] %vm509_vm7, %v506_v51  ;;  %511 = vst.msk [vmem:[%s257_s27 + $0x2] sm:$0x3] %vm509_vm7, %v508_v52 }
 0x238   : > { %889 = shalt.err (!%p886_p10)
}
 0x239   : > { %s890_s13 = scalar_lea.hbm %s1123_s12, 64  ;;  %s894_s24 = scalar_lea.hbm %s1178_s5, 128 }
 0x23a   : > { %p891_p11 = scmp.ne.s32.totalorder %s1123_s12, %s890_s13  ;;  %p895_p0 = scmp.lt.u32.totalorder %s1123_s12, %s1178_s5 }
 0x23b   : > { %p896_p1 = scmp.lt.u32.totalorder %s894_s24, %s890_s13  ;;  %p898_p3 = scmp.lt.u32.totalorder %s890_s13, %s1123_s12 }
 0x23c   : > { %p892_p12 = pnand %p891_p11, %p1041_p4 }
 0x23d   : > { %p897_p2 = por %p896_p1, %p895_p0 }
 0x23e   : > { %p893_p13 = pneg %p892_p12 }
 0x23f   : > { %p899_p5 = por %p898_p3, %p897_p2 }
 0x241   : > { %p900_p6 = pnand %p899_p5, %p893_p13 }
 0x243   : > { %903 = shalt.err (!%p900_p6)
}
 0x244   : > { %s969_s7 = smov 32   ;;  %s970_s9 = smov 2  }
 0x245   : > { %767 = dma.vmem_to_hbm [thread:$0]  (%p1041_p4), %s1125_s29, 64, %s1123_s12, %s527_s21, %s969_s7, %s969_s7, %s970_s9  }
 0x246 PF: > { %p777_p7 = scmp.ge.s32.totalorder %s958_s23, 2  ;;  %s591_s15 = sand.u32 1, %s938_s18  }
 0x247   : > { %s592_s16 = scalar_lea.sflag [#allocation3], %s591_s15 }
 0x248   : > { %p771_p9 = pnand %p777_p7, %p1048_p8 }
 0x24a   : > { %929 = dma.done.wait (!%p771_p9), %s592_s16, 256  }
 0x24b   : > { %931 = vsyncadd (!%p771_p9), %s592_s16, 4294967040  ;;  %s601_s10 = scalar_lea.sflag [#allocation5], %s591_s15 }
 0x24c   : > { %933 = dma.done.wait (!%p771_p9), %s601_s10, 64  }
 0x24d   : > { %935 = vsyncadd (!%p771_p9), %s601_s10, 4294967232  ;;  %s22_s23 = sadd.s32 1, %s958_s23   ;;  %s1181_s18 = smov %s942_s19 }
 0x24e   : > { %p19_p10 = scmp.ge.s32.totalorder %s22_s23, 4   ;;  %s1182_s19 = smov %s946_s20 }
 0x24f   : > { %s1183_s20 = smov %s1054_s6  ;;  %s1184_s21 = smov %s954_s22 }
 0x250   : > { %s1185_s22 = smov %s1187_s26  ;;  %21 = sbr.rel (!%p19_p10) target bundleno = 6 (0x6), region = 97 }
 0x257   :  { %606 = vsyncpa [#allocation3], 1 }
 0x258   :  { %608 = vsyncpa [#allocation3 + $0x1], 1 }
 0x259   :  { %609 = vsyncpa [#allocation5], 1 }
 0x25a   :  { %611 = vsyncpa [#allocation5 + $0x1], 1 }

</bundles_post_ra>
